<compile_context>
chip_gen: v5e
topology: v5e:2x2
jax: 0.10.0
libtpu: 0.0.40
codegen_flags: <defaults>
</compile_context>

<pallas_src>
import functools

import jax
import jax.numpy as jnp
from jax import lax
from jax.experimental import pallas as pl
from jax.experimental.pallas import tpu as pltpu


def _round_up(a, b):
    return -(-a // b) * b


# ---------------------------------------------------------------------------
# Weights-only preprocessing: collapse conv1 -> conv2 -> conv3 -> avgpool(1)
# (all linear — the PyTorch module has no activation) into one affine map.
# ---------------------------------------------------------------------------
def _compose_effective_linear(params, c_in, length):
    """Returns (w_eff, b_eff) with y[n] = w_eff @ x[n].reshape(c_in*length) + b_eff."""
    d = c_in * length
    basis = jnp.concatenate(
        [jnp.zeros((1, d), jnp.float32), jnp.eye(d, dtype=jnp.float32)], axis=0
    ).reshape(d + 1, c_in, length)
    h = basis
    for i in (1, 2, 3):
        w = params[f"w{i}"].astype(jnp.float32)
        b = params[f"b{i}"].astype(jnp.float32)
        h = lax.conv_general_dilated(
            h, w, window_strides=(1,), padding="VALID",
            dimension_numbers=("NCH", "OIH", "NCH"),
            precision=lax.Precision.HIGHEST,
        ) + b[None, :, None]
    pooled = jnp.mean(h, axis=-1)                 # (d+1, Cout)
    b_eff = pooled[0]                             # response to the zero input
    w_eff = (pooled[1:] - b_eff[None, :]).T       # (Cout, d)
    return w_eff, b_eff


# ---------------------------------------------------------------------------
# Kernel: one batch block ->  (Cout, TB) = W_eff (Cout, D) @ X^T (D, TB) + b
# ---------------------------------------------------------------------------
def _fextractor_kernel(x_ref, w_ref, b_ref, o_ref, *, exact):
    x = x_ref[...]                                # (TB, D)  f32, natural layout
    w = w_ref[...]                                # (Cout, D) f32, VMEM-resident

    def nt(a, b_):                                # A @ B^T -> lane-dense (Cout, TB)
        return lax.dot_general(
            a, b_, dimension_numbers=(((1,), (1,)), ((), ())),
            preferred_element_type=jnp.float32)

    if exact:
        # ~f32-accurate matmul from 3 default (bf16) MXU passes via error-free
        # hi/lo splits; MXU has large slack here (kernel is HBM-bound).
        w_hi = w.astype(jnp.bfloat16).astype(jnp.float32)
        x_hi = x.astype(jnp.bfloat16).astype(jnp.float32)
        acc = nt(w_hi, x_hi) + nt(w_hi, x - x_hi) + nt(w - w_hi, x_hi)
    else:
        acc = nt(w, x)                            # single bf16 MXU pass
    o_ref[...] = (acc + b_ref[...]).astype(o_ref.dtype)


# ---------------------------------------------------------------------------
# Wrapper
# ---------------------------------------------------------------------------
def fextractor_cnn_pallas(x, params, *, block_batch=2048, exact_matmul=True):
    """x: (N, Cin, L); params: w{i} (Co, Ci, K), b{i} (Co,).  Returns (N, Cout, 1)."""
    n, c_in, length = x.shape
    ks = [int(params[f"w{i}"].shape[-1]) for i in (1, 2, 3)]
    c_out = int(params["w3"].shape[0])
    if length - sum(ks) + len(ks) < 1:
        raise ValueError("input length smaller than the cumulative receptive field")
    d = c_in * length

    # Per-model preprocessing (independent of the batch); cache / jit outside the
    # hot loop in practice.
    w_eff, b_eff = _compose_effective_linear(params, c_in, length)
    b_col = b_eff.reshape(-1, 1)

    # --- batch tiling: TB always a multiple of 128 (lane-dense output slab) ----
    tb = min(_round_up(max(block_batch, 128), 128), _round_up(n, 128))
    # Prefer >= 2 blocks when there is enough work so the "parallel" grid axis can
    # shard across both TensorCores on v7x (harmless on single-TC v5e/v6e).
    if n > 128:
        tb = min(tb, _round_up(_round_up(n, 128) // 2, 128))

    def _block_bytes(t):   # double-buffered input + output tiles, resident weights
        return 4 * (2 * t * d + 2 * c_out * t + c_out * (d + 1))

    vmem_budget = 48 * 1024 * 1024                # conservative: v7x has 64 MiB VMEM
    while tb > 128 and _block_bytes(tb) > vmem_budget:
        tb = max(128, _round_up(tb // 2, 128))

    npad = _round_up(n, tb)
    nb = npad // tb

    xf = x.reshape(n, d).astype(jnp.float32)      # free reshape: no HBM relayout
    if npad != n:
        xf = jnp.pad(xf, ((0, npad - n), (0, 0)))

    flops = 2 * npad * d * c_out * (3 if exact_matmul else 1)
    bytes_accessed = 4 * (npad * d + c_out * npad + c_out * (d + 1))
    vmem_limit = int(max(8 << 20, min(vmem_budget, _block_bytes(tb) + (4 << 20))))

    out = pl.pallas_call(
        functools.partial(_fextractor_kernel, exact=exact_matmul),
        out_shape=jax.ShapeDtypeStruct((c_out, npad), jnp.float32),
        grid_spec=pl.GridSpec(
            grid=(nb,),
            in_specs=[
                pl.BlockSpec((tb, d), lambda i: (i, 0)),        # batch block (natural layout)
                pl.BlockSpec((c_out, d), lambda i: (0, 0)),     # resident effective weights
                pl.BlockSpec((c_out, 1), lambda i: (0, 0)),     # resident bias column
            ],
            out_specs=pl.BlockSpec((c_out, tb), lambda i: (0, i)),  # lane-dense slab
        ),
        compiler_params=pltpu.CompilerParams(
            dimension_semantics=("parallel",),
            vmem_limit_bytes=vmem_limit,
        ),
        cost_estimate=pl.CostEstimate(
            flops=flops, transcendentals=0, bytes_accessed=bytes_accessed),
    )(xf, w_eff, b_col)

    # (Cout, Npad) -> PyTorch layout (N, Cout, 1).
    return out[:, :n].T[:, :, None]


# ---------------------------------------------------------------------------
# Parameters + pure-JAX reference (PyTorch semantics)
# ---------------------------------------------------------------------------
def make_params(key, in_channels, out_channels, window_x, kernel_size=2):
    """PyTorch Conv1d default init: U(-1/sqrt(fan_in), +1/sqrt(fan_in))."""
    k1 = kernel_size if window_x > 16 else 1
    k2 = kernel_size * 2 if window_x > 16 else 1
    k3 = kernel_size * 4 if window_x > 16 else 1
    shapes = [(out_channels, in_channels, k1),
              (out_channels * 2, out_channels, k2),
              (out_channels, out_channels * 2, k3)]
    params = {}
    keys = jax.random.split(key, 6)
    for i, (co, ci, kk) in enumerate(shapes, start=1):
        bound = 1.0 / jnp.sqrt(jnp.float32(ci * kk))
        params[f"w{i}"] = jax.random.uniform(keys[2 * (i - 1)], (co, ci, kk),
                                             jnp.float32, -bound, bound)
        params[f"b{i}"] = jax.random.uniform(keys[2 * (i - 1) + 1], (co,),
                                             jnp.float32, -bound, bound)
    return params


def fextractor_cnn_ref(x, params):
    """Pure-JAX reference: 3x valid conv1d (NCL, stride 1) + mean pool, f32 precision."""
    dn = ("NCH", "OIH", "NCH")
    h = x.astype(jnp.float32)
    for i in (1, 2, 3):
        w, b = params[f"w{i}"], params[f"b{i}"]
        h = lax.conv_general_dilated(h, w, window_strides=(1,), padding="VALID",
                                     dimension_numbers=dn,
                                     precision=lax.Precision.HIGHEST) + b[None, :, None]
    return jnp.mean(h, axis=-1, keepdims=True)


if __name__ == "__main__":
    key = jax.random.PRNGKey(0)
    kx, kp, kx2, kp3, kx3 = jax.random.split(key, 5)

    # window_x = 32 (> 16 -> conv kernels 2/4/8), Cin=4, Cout=8.
    N, C_in, C_out, L = 2, 4, 8, 32
    x = jax.random.normal(kx, (N, C_in, L), jnp.float32)
    params = make_params(kp, C_in, C_out, window_x=L, kernel_size=2)

    out = jax.block_until_ready(fextractor_cnn_pallas(x, params))
    ref = jax.block_until_ready(fextractor_cnn_ref(x, params))
    assert out.shape == (N, C_out, 1), out.shape
    assert jnp.allclose(out, ref, atol=1e-4, rtol=1e-4), float(jnp.max(jnp.abs(out - ref)))

    # Tiled / padded multi-block path (TB=128, 2 grid steps, batch padding).
    N2 = 130
    x2 = jax.random.normal(kx2, (N2, C_in, L), jnp.float32)
    out2 = jax.block_until_ready(fextractor_cnn_pallas(x2, params, block_batch=128))
    ref2 = jax.block_until_ready(fextractor_cnn_ref(x2, params))
    assert out2.shape == (N2, C_out, 1), out2.shape
    assert jnp.allclose(out2, ref2, atol=1e-4, rtol=1e-4), float(jnp.max(jnp.abs(out2 - ref2)))

    # window_x = 16 (<= 16 -> all conv kernels are 1); D = Cin*L = 64 (< 128 lanes).
    L3 = 16
    params3 = make_params(kp3, C_in, C_out, window_x=L3, kernel_size=2)
    x3 = jax.random.normal(kx3, (3, C_in, L3), jnp.float32)
    out3 = jax.block_until_ready(fextractor_cnn_pallas(x3, params3))
    ref3 = jax.block_until_ready(fextractor_cnn_ref(x3, params3))
    assert out3.shape == (3, C_out, 1), out3.shape
    assert jnp.allclose(out3, ref3, atol=1e-4, rtol=1e-4), float(jnp.max(jnp.abs(out3 - ref3)))

    print("KERNEL_OK")
</pallas_src>

<mosaic_0001>
module attributes {stable_mosaic.version = 11 : i64} {
  func.func @_fextractor_kernel(%arg0: i32, %arg1: memref<128x128xf32, #tpu.memory_space<vmem>>, %arg2: memref<8x128xf32, #tpu.memory_space<vmem>>, %arg3: memref<8x1xf32, #tpu.memory_space<vmem>>, %arg4: memref<8x128xf32, #tpu.memory_space<vmem>>) attributes {dimension_semantics = [#tpu.dimension_semantics<parallel>], iteration_bounds = array<i64: 1>, scalar_prefetch = 0 : i64, scratch_operands = 0 : i64, tpu.core_type = #tpu.core_type<tc>, window_params = [{transform_indices = @transform_0, window_bounds = array<i64: 128, 128>}, {pipeline_mode = #tpu.pipeline_mode<synchronous>, transform_indices = @transform_1, window_bounds = array<i64: 8, 128>}, {pipeline_mode = #tpu.pipeline_mode<synchronous>, transform_indices = @transform_2, window_bounds = array<i64: 8, 1>}, {transform_indices = @transform_3, window_bounds = array<i64: 8, 128>}]} {
    %c0 = arith.constant 0 : index
    %c0_0 = arith.constant 0 : index
    %0 = vector.load %arg1[%c0, %c0_0] : memref<128x128xf32, #tpu.memory_space<vmem>>, vector<128x128xf32>
    %c0_1 = arith.constant 0 : index
    %c0_2 = arith.constant 0 : index
    %1 = vector.load %arg2[%c0_1, %c0_2] : memref<8x128xf32, #tpu.memory_space<vmem>>, vector<8x128xf32>
    %2 = arith.truncf %1 : vector<8x128xf32> to vector<8x128xbf16>
    %3 = arith.extf %2 : vector<8x128xbf16> to vector<8x128xf32>
    %4 = arith.truncf %0 : vector<128x128xf32> to vector<128x128xbf16>
    %5 = arith.extf %4 : vector<128x128xbf16> to vector<128x128xf32>
    %cst = arith.constant dense<0.000000e+00> : vector<8x128xf32>
    %6 = tpu.matmul %3, %5, %cst {dimension_numbers = #tpu.dot_dimension_numbers<[1], [1], [0], [0], [0, 0, 1, 0], [], []>} : vector<8x128xf32>, vector<128x128xf32>, vector<8x128xf32> -> vector<8x128xf32>
    %7 = arith.subf %0, %5 : vector<128x128xf32>
    %cst_3 = arith.constant dense<0.000000e+00> : vector<8x128xf32>
    %8 = tpu.matmul %3, %7, %cst_3 {dimension_numbers = #tpu.dot_dimension_numbers<[1], [1], [0], [0], [0, 0, 1, 0], [], []>} : vector<8x128xf32>, vector<128x128xf32>, vector<8x128xf32> -> vector<8x128xf32>
    %9 = arith.addf %6, %8 : vector<8x128xf32>
    %10 = arith.subf %1, %3 : vector<8x128xf32>
    %cst_4 = arith.constant dense<0.000000e+00> : vector<8x128xf32>
    %11 = tpu.matmul %10, %5, %cst_4 {dimension_numbers = #tpu.dot_dimension_numbers<[1], [1], [0], [0], [0, 0, 1, 0], [], []>} : vector<8x128xf32>, vector<128x128xf32>, vector<8x128xf32> -> vector<8x128xf32>
    %12 = arith.addf %9, %11 : vector<8x128xf32>
    %c0_5 = arith.constant 0 : index
    %c0_6 = arith.constant 0 : index
    %13 = vector.load %arg3[%c0_5, %c0_6] : memref<8x1xf32, #tpu.memory_space<vmem>>, vector<8x1xf32>
    %14 = vector.broadcast %13 : vector<8x1xf32> to vector<8x128xf32>
    %15 = arith.addf %12, %14 : vector<8x128xf32>
    %c0_7 = arith.constant 0 : index
    %c0_8 = arith.constant 0 : index
    %16 = vector.load %arg4[%c0_7, %c0_8] : memref<8x128xf32, #tpu.memory_space<vmem>>, vector<8x128xf32>
    tpu.vector_store %arg4[%c0_7, %c0_8], %15 {strides = array<i32>} : memref<8x128xf32, #tpu.memory_space<vmem>>, vector<8x128xf32>,
    return
  }
  func.func @transform_0(%arg0: i32) -> (i32, i32) {
    %c0_i32 = arith.constant 0 : i32
    %c0_i32_0 = arith.constant 0 : i32
    return %arg0, %c0_i32 : i32, i32
  }
  func.func @transform_1(%arg0: i32) -> (i32, i32) {
    %c0_i32 = arith.constant 0 : i32
    %c0_i32_0 = arith.constant 0 : i32
    %c0_i32_1 = arith.constant 0 : i32
    return %c0_i32, %c0_i32_0 : i32, i32
  }
  func.func @transform_2(%arg0: i32) -> (i32, i32) {
    %c0_i32 = arith.constant 0 : i32
    %c0_i32_0 = arith.constant 0 : i32
    %c0_i32_1 = arith.constant 0 : i32
    return %c0_i32, %c0_i32_0 : i32, i32
  }
  func.func @transform_3(%arg0: i32) -> (i32, i32) {
    %c0_i32 = arith.constant 0 : i32
    %c0_i32_0 = arith.constant 0 : i32
    return %c0_i32, %arg0 : i32, i32
  }
}

</mosaic_0001>

<bundles_post_ra>
// kernel: tpu_custom_call.1
= control target key start
LH: loop header
LB: loop body
LE: loop exit
PB: predicated region body
PF: predicated region fallthrough
CT: control target
= control target key end

     0   :  { %8 = vsyncpa [#allocation3], 0  ;;  %s280_s0 = inlined_call_operand.hbm [shape: f32[128,128], index: 0, kind: input, shape index: {}]   ;;  %s281_s1 = inlined_call_operand.vmem [shape: f32[8,128], index: 1, kind: input, shape index: {}]   ;;  %s282_s2 = inlined_call_operand.vmem [shape: f32[8,1], index: 2, kind: input, shape index: {}]   ;;  %s283_s3 = inlined_call_operand.hbm [shape: f32[8,128], index: 3, kind: output, shape index: {}]  }
   0x1   :  { %9 = vsyncpa [#allocation4], 0  ;;  %s14_s14 = sshll.u32 %s280_s0, 4  ;;  %s243_s15 = smov [#allocation2]   ;;  %s15_s14 = int_to_ptr.hbm [resolvable:$true] %s14_s14 }
   0x2   :  { %s16_s16 = sshll.u32 %s243_s15, 4  ;;  %s244_s17 = smov 128   ;;  %s17_s16 = int_to_ptr.vmem [resolvable:$true] %s16_s16 }
   0x3   :  { %s245_s18 = smov 8  }
   0x4   :  { %22 = dma.hbm_to_vmem [thread:$0]  %s15_s14, 2048, %s17_s16, [#allocation3], %s244_s17, %s244_s17, %s245_s18  }
   0x5   :  { %239 = dma.done.wait [#allocation3], 2048  }
   0x6   :  { %240 = vsyncadd [#allocation3], 4294965248  ;;  %v46_v0 = vld [vmem:[#allocation2 + $0x78] sm:$0xff]  ;;  %v45_v1 = vld [vmem:[#allocation2 + $0x70] sm:$0xff]  ;;  %v246_v44 = vmov 0   ;;  %s175_s24 = sshll.u32 %s283_s3, 4  ;;  %s176_s24 = int_to_ptr.hbm [resolvable:$true] %s175_s24 }
   0x7   :  { %v65_v2 = vpack.c.bf16 %v46_v0, %v46_v0  ;;  %v64_v3 = vpack.c.bf16 %v45_v1, %v45_v1  ;;  %v44_v4 = vld [vmem:[#allocation2 + $0x68] sm:$0xff]  ;;  %v43_v9 = vld [vmem:[#allocation2 + $0x60] sm:$0xff]  ;;  %v42_v13 = vld [vmem:[#allocation2 + $0x58] sm:$0xff]  ;;  %190 = vset.pattern.permute.xlu0 %v246_v44 }
   0x8   :  { %v63_v8 = vpack.c.bf16 %v44_v4, %v44_v4  ;;  %v62_v12 = vpack.c.bf16 %v43_v9, %v43_v9  ;;  %v61_v16 = vpack.c.bf16 %v42_v13, %v42_v13  ;;  %v41_v17 = vld [vmem:[#allocation2 + $0x50] sm:$0xff]  ;;  %v40_v21 = vld [vmem:[#allocation2 + $0x48] sm:$0xff]  ;;  %v39_v25 = vld [vmem:[#allocation2 + $0x40] sm:$0xff] }
   0x9   :  { %v81_v5 = vunpack.c.l.bf16 %v65_v2  ;;  %v80_v7 = vunpack.c.l.bf16 %v64_v3  ;;  %v60_v20 = vpack.c.bf16 %v41_v17, %v41_v17  ;;  %v59_v24 = vpack.c.bf16 %v40_v21, %v40_v21  ;;  %v38_v29 = vld [vmem:[#allocation2 + $0x38] sm:$0xff]  ;;  %v37_v33 = vld [vmem:[#allocation2 + $0x30] sm:$0xff]  ;;  %v36_v37 = vld [vmem:[#allocation2 + $0x28] sm:$0xff] }
   0xa   :  { %v79_v11 = vunpack.c.l.bf16 %v63_v8  ;;  %v78_v15 = vunpack.c.l.bf16 %v62_v12  ;;  %v77_v19 = vunpack.c.l.bf16 %v61_v16  ;;  %v58_v28 = vpack.c.bf16 %v39_v25, %v39_v25  ;;  %v35_v41 = vld [vmem:[#allocation2 + $0x20] sm:$0xff]  ;;  %v34_v47 = vld [vmem:[#allocation2 + $0x18] sm:$0xff]  ;;  %v33_v51 = vld [vmem:[#allocation2 + $0x10] sm:$0xff] }
   0xb   :  { %139 = vmatpush.xpose.msra.mxu2 %v81_v5  ;;  %v97_v6 = vsub.f32 %v46_v0, %v81_v5  ;;  %118 = vmatpush.xpose.msra.mxu1 %v81_v5  ;;  %v96_v10 = vsub.f32 %v45_v1, %v80_v7  ;;  %v76_v23 = vunpack.c.l.bf16 %v60_v20  ;;  %v75_v27 = vunpack.c.l.bf16 %v59_v24  ;;  %v160_v42 = vld [vmem:[%s282_s2] sm:$0xff]  ;;  %v32_v55 = vld [vmem:[#allocation2 + $0x8] sm:$0xff] }
   0xc   :  { %v95_v14 = vsub.f32 %v44_v4, %v79_v11  ;;  %v94_v18 = vsub.f32 %v43_v9, %v78_v15  ;;  %v93_v22 = vsub.f32 %v42_v13, %v77_v19  ;;  %v74_v31 = vunpack.c.l.bf16 %v58_v28  ;;  %163 = vperm.xlu0 %190, %v160_v42   ;;  %v47_v59 = vld [vmem:[%s281_s1] sm:$0xff]  ;;  %s247_s1 = smov [#allocation5]  }
   0xd   :  { %98 = vmatpush.xpose.msra.mxu0 %v97_v6  ;;  %v92_v26 = vsub.f32 %v41_v17, %v76_v23  ;;  %v91_v30 = vsub.f32 %v40_v21, %v75_v27  ;;  %v57_v32 = vpack.c.bf16 %v38_v29, %v38_v29  ;;  %v56_v36 = vpack.c.bf16 %v37_v33, %v37_v33  ;;  %v31_v60 = vld [vmem:[#allocation2] sm:$0xff]  ;;  %s173_s21 = sshll.u32 %s247_s1, 4  ;;  %s174_s21 = int_to_ptr.vmem [resolvable:$true] %s173_s21 }
   0xe   :  { %v90_v34 = vsub.f32 %v39_v25, %v74_v31  ;;  %v55_v40 = vpack.c.bf16 %v36_v37, %v36_v37  ;;  %v54_v46 = vpack.c.bf16 %v35_v41, %v35_v41  ;;  %v53_v50 = vpack.c.bf16 %v34_v47, %v34_v47 }
   0xf   :  { %140 = vmatpush.xpose.msra.mxu2 %v80_v7  ;;  %119 = vmatpush.xpose.msra.mxu1 %v80_v7  ;;  %v73_v35 = vunpack.c.l.bf16 %v57_v32  ;;  %v72_v39 = vunpack.c.l.bf16 %v56_v36  ;;  %v52_v54 = vpack.c.bf16 %v33_v51, %v33_v51  ;;  %v51_v58 = vpack.c.bf16 %v32_v55, %v32_v55 }
  0x10   :  { %v71_v45 = vunpack.c.l.bf16 %v55_v40  ;;  %v70_v49 = vunpack.c.l.bf16 %v54_v46  ;;  %v69_v53 = vunpack.c.l.bf16 %v53_v50  ;;  %v48_v62 = vpack.c.bf16 %v47_v59, %v47_v59 }
  0x11   :  { %99 = vmatpush.xpose.msra.mxu0 %v96_v10  ;;  %v89_v38 = vsub.f32 %v38_v29, %v73_v35  ;;  %v88_v43 = vsub.f32 %v37_v33, %v72_v39  ;;  %v68_v57 = vunpack.c.l.bf16 %v52_v54  ;;  %v67_v63 = vunpack.c.l.bf16 %v51_v58 }
  0x12   :  { %v87_v48 = vsub.f32 %v36_v37, %v71_v45  ;;  %v86_v52 = vsub.f32 %v35_v41, %v70_v49  ;;  %v85_v56 = vsub.f32 %v34_v47, %v69_v53  ;;  %v50_v0 = vpack.c.bf16 %v31_v60, %v31_v60 }
  0x13   :  { %141 = vmatpush.xpose.msra.mxu2 %v79_v11  ;;  %120 = vmatpush.xpose.msra.mxu1 %v79_v11  ;;  %v84_v61 = vsub.f32 %v33_v51, %v68_v57  ;;  %v83_v1 = vsub.f32 %v32_v55, %v67_v63  ;;  %v49_v2 = vunpack.c.l.bf16 %v48_v62 }
  0x14   :  { %v66_v3 = vunpack.c.l.bf16 %v50_v0 }
  0x15   :  { %100 = vmatpush.xpose.msra.mxu0 %v95_v14  ;;  %v138_v5 = vsub.f32 %v47_v59, %v49_v2 }
  0x16   :  { %v82_v4 = vsub.f32 %v31_v60, %v66_v3 }
  0x17   :  { %142 = vmatpush.xpose.msra.mxu2 %v78_v15  ;;  %121 = vmatpush.xpose.msra.mxu1 %v78_v15 }
  0x19   :  { %101 = vmatpush.xpose.msra.mxu0 %v94_v18 }
  0x1b   :  { %143 = vmatpush.xpose.msra.mxu2 %v77_v19  ;;  %122 = vmatpush.xpose.msra.mxu1 %v77_v19 }
  0x1d   :  { %102 = vmatpush.xpose.msra.mxu0 %v93_v22 }
  0x1f   :  { %144 = vmatpush.xpose.msra.mxu2 %v76_v23  ;;  %123 = vmatpush.xpose.msra.mxu1 %v76_v23 }
  0x21   :  { %103 = vmatpush.xpose.msra.mxu0 %v92_v26 }
  0x23   :  { %145 = vmatpush.xpose.msra.mxu2 %v75_v27  ;;  %124 = vmatpush.xpose.msra.mxu1 %v75_v27 }
  0x25   :  { %104 = vmatpush.xpose.msra.mxu0 %v91_v30 }
  0x27   :  { %146 = vmatpush.xpose.msra.mxu2 %v74_v31  ;;  %125 = vmatpush.xpose.msra.mxu1 %v74_v31 }
  0x29   :  { %105 = vmatpush.xpose.msra.mxu0 %v90_v34 }
  0x2b   :  { %147 = vmatpush.xpose.msra.mxu2 %v73_v35  ;;  %126 = vmatpush.xpose.msra.mxu1 %v73_v35 }
  0x2d   :  { %106 = vmatpush.xpose.msra.mxu0 %v89_v38 }
  0x2f   :  { %148 = vmatpush.xpose.msra.mxu2 %v72_v39  ;;  %127 = vmatpush.xpose.msra.mxu1 %v72_v39 }
  0x31   :  { %107 = vmatpush.xpose.msra.mxu0 %v88_v43 }
  0x33   :  { %149 = vmatpush.xpose.msra.mxu2 %v71_v45  ;;  %128 = vmatpush.xpose.msra.mxu1 %v71_v45 }
  0x35   :  { %108 = vmatpush.xpose.msra.mxu0 %v87_v48 }
  0x37   :  { %150 = vmatpush.xpose.msra.mxu2 %v70_v49  ;;  %129 = vmatpush.xpose.msra.mxu1 %v70_v49 }
  0x39   :  { %109 = vmatpush.xpose.msra.mxu0 %v86_v52 }
  0x3b   :  { %151 = vmatpush.xpose.msra.mxu2 %v69_v53  ;;  %130 = vmatpush.xpose.msra.mxu1 %v69_v53 }
  0x3d   :  { %110 = vmatpush.xpose.msra.mxu0 %v85_v56 }
  0x3f   :  { %152 = vmatpush.xpose.msra.mxu2 %v68_v57  ;;  %131 = vmatpush.xpose.msra.mxu1 %v68_v57 }
  0x41   :  { %111 = vmatpush.xpose.msra.mxu0 %v84_v61 }
  0x43   :  { %153 = vmatpush.xpose.msra.mxu2 %v67_v63  ;;  %132 = vmatpush.xpose.msra.mxu1 %v67_v63 }
  0x45   :  { %112 = vmatpush.xpose.msra.mxu0 %v83_v1 }
  0x47   :  { %154 = vmatpush.xpose.msra.mxu2 %v66_v3  ;;  %133 = vmatpush.xpose.msra.mxu1 %v66_v3 }
  0x49   :  { %113 = vmatpush.xpose.msra.mxu0 %v82_v4 }
  0x4a   :  { %155 = vmatmul.f32.vlgmr.msra.gmra.mxu2 %v138_v5  ;;  %134 = vmatmul.f32.vlgmr.msra.gmra.mxu1 %v49_v2 }
  0x4c   :  { %114 = vmatmul.f32.vlgmr.msra.gmra.mxu0 %v49_v2 }
  0x7e   :  { %v164_v10 = vpop.permute.xlu0 %163 }
  0xc7   :  { %v135_v6 = vpop.f32.mrf.mxu1 }
  0xc9   :  { %v115_v7 = vpop.f32.mrf.mxu0 }
  0xca   :  { %v136_v8 = vadd.f32 %v135_v6, %v115_v7 }
  0xcd   :  { %v156_v9 = vpop.f32.mrf.mxu2 }
  0xce   :  { %v159_v11 = vadd.f32 %v156_v9, %v136_v8 }
  0xd0   :  { %v166_v12 = vadd.f32 %v164_v10, %v159_v11 }
  0xd2   :  { %167 = vst [vmem:[#allocation5] sm:$0xff] %v166_v12 }
  0xd3   :  { %178 = dma.vmem_to_hbm [thread:$0]  %s174_s21, 128, %s176_s24, [#allocation4]  }
  0xd4   :  { %241 = dma.done.wait [#allocation4], 128  }
  0xd5   :  { %242 = vsyncadd [#allocation4], 4294967168 }
  0xd6   :  { %183 = vsyncpa [#allocation3], 1 }
  0xd7   :  { %184 = vsyncpa [#allocation4], 1 }

</bundles_post_ra>
